<compile_context>
chip_gen: v7x
topology: tpu7x:2x2x1
jax: 0.10.0
libtpu: 0.0.40
codegen_flags: <defaults>
</compile_context>

<pallas_src>
import numpy as np
import jax
import jax.numpy as jnp
from jax import lax
from jax.experimental import pallas as pl
from jax.experimental.pallas import tpu as pltpu

# ------------------------- model hyper-parameters ---------------------------
N_WORD = 20
N_POS = 10
INPUT_SIZE = 16
POS_SIZE = 8
HIDDEN_SIZE = 32
WINDOW = 3
MAX_POS = 100.0
BATCH = 2
SEQ_LEN = 8
D_IN = INPUT_SIZE + 2 * POS_SIZE          # conv in-channels (32)

NW2 = N_WORD + 2                          # word vocab rows (22)
NP1 = N_POS + 1                           # pos vocab rows (11)
VTOT = NW2 + 2 * NP1                      # one window's one-hot width (44)

NEG_INF = -1e30                           # exact piece-select gate
SENTINEL = -(1 << 20)                     # id that matches no one-hot lane (halo rows)


# ------------------------------ Pallas kernel -------------------------------
def pcnn_kernel(idx_ref, piece_ref, w_ref, b_ref, out_ref):
    """Fused PCNN forward for one batch tile.

    idx_ref  : (TB*L, 10) int32.  col 0 = piece id (0..3); cols 1..9 = global
               one-hot positions for [prev | cur | next] x [word, pos1, pos2]
               (halo rows carry SENTINEL -> all-zero one-hot block = zero pad).
    piece_ref: (1, 3H) int32, pattern [1,2,3,1,2,3,...] (piece owning lane j).
    w_ref    : (3*VTOT, 3H) f32, embedding tables folded into conv weight and
               column-tripled so lane j reads conv channel j//3.
    b_ref    : (1, 3H) f32 column-tripled conv bias.
    out_ref  : (TB, 3H) f32, relu(piecewise max pool) in torch's h-major layout.
    """
    tbl, ncol = idx_ref.shape
    kdim = w_ref.shape[0]                                   # 3 * VTOT
    tb, h3 = out_ref.shape
    seq = tbl // tb

    idx = idx_ref[...]                                      # (tbl, 10) int32
    lane = lax.broadcasted_iota(jnp.int32, (tbl, kdim), 1)  # one-hot lane index

    # combined [prev | cur | next] one-hot: 9 compares OR'd (VPU); SENTINEL and
    # offset-disjoint id ranges guarantee at most one hit per (row, lane).
    hit = lane == idx[:, 1:2]
    for c in range(2, ncol):                                # static unroll
        hit = jnp.logical_or(hit, lane == idx[:, c:c + 1])
    oh = hit.astype(jnp.float32)                            # (tbl, kdim)

    # embedding lookup + window-3 conv + channel-triplication in one MXU matmul
    conv = jnp.dot(oh, w_ref[...],
                   preferred_element_type=jnp.float32) + b_ref[...]   # (tbl, 3H)

    # exact piecewise max pool: lane j belongs to piece (j % 3) + 1
    gated = jnp.where(idx[:, 0:1] == piece_ref[...], conv, NEG_INF)
    pooled = jnp.max(gated.reshape(tb, seq, h3), axis=1)    # (tb, 3H)
    out_ref[...] = jnp.maximum(pooled, 0.0)                 # relu, 96-lane store


# ------------------------------- wrapper -------------------------------------
def pcnn_encoder_pallas(inputs, pos1, pos2, musk, w_wide, b_wide, piece_ids):
    """inputs/pos1/pos2/musk: (B, L) int32; w_wide: (3*VTOT, 3H); b_wide/piece_ids: (1, 3H)."""
    B, L = inputs.shape
    K, H3 = w_wide.shape

    # --- tiny int32 index prep (fuses with the pallas_call under jit) ---------
    def pos_cols(base):  # global one-hot positions for one window block
        return jnp.stack([inputs + base,
                          pos1 + base + NW2,
                          pos2 + base + NW2 + NP1], axis=-1)          # (B, L, 3)

    cur = pos_cols(VTOT)
    prv = pos_cols(0)
    nxt = pos_cols(2 * VTOT)
    halo = jnp.full((B, 1, 3), SENTINEL, jnp.int32)
    prv = jnp.concatenate([halo, prv[:, :L - 1, :]], axis=1)   # row t -> token t-1 ids
    nxt = jnp.concatenate([nxt[:, 1:, :], halo], axis=1)       # row t -> token t+1 ids
    idx_all = jnp.concatenate(
        [musk[..., None].astype(jnp.int32), prv, cur, nxt], axis=-1)  # (B, L, 10)
    idx_all = idx_all.astype(jnp.int32).reshape(B * L, 1 + 3 * WINDOW)

    # --- batch tiling: whole batch in one step when tiny, tile when it pays ---
    # (blocks must keep the second-minor dim a multiple of 8 or the full extent)
    if B >= 64 and B % 8 == 0:
        TB = 8
    else:
        TB = B
    grid = (B // TB,)
    # VMEM footprint per step is a few hundred KiB at realistic PCNN sizes —
    # nowhere near the 16/32 MiB default scoped VMEM (v5e/v6e-v7x); no
    # vmem_limit_bytes override needed.

    out = pl.pallas_call(
        pcnn_kernel,
        out_shape=jax.ShapeDtypeStruct((B, H3), jnp.float32),
        grid_spec=pltpu.PrefetchScalarGridSpec(
            num_scalar_prefetch=0,
            grid=grid,
            in_specs=[
                pl.BlockSpec((TB * L, 1 + 3 * WINDOW), lambda b: (b, 0)),  # ids
                pl.BlockSpec((1, H3), lambda b: (0, 0)),                   # piece pattern
                pl.BlockSpec((K, H3), lambda b: (0, 0)),                   # fused weight
                pl.BlockSpec((1, H3), lambda b: (0, 0)),                   # fused bias
            ],
            out_specs=pl.BlockSpec((TB, H3), lambda b: (b, 0)),
        ),
        compiler_params=pltpu.CompilerParams(
            dimension_semantics=("parallel",)),
    )(idx_all, piece_ids, w_wide, b_wide)

    # TODO(synk): dropout treated as inference-mode identity (torch RNG not reproducible)
    return out


# ------------------------- deterministic parameters -------------------------
def build_params():
    # word embedding: (n_word+2, input_size), padding row zeroed (pretrain=False path)
    word_w = np.asarray(np.random.RandomState(7).normal(
        size=(N_WORD + 2, INPUT_SIZE)), dtype=np.float32)
    word_w[N_WORD + 1] = 0.0
    # position embeddings (seeds 91/92 as in the module)
    pos1_w = np.asarray(np.random.RandomState(91).uniform(
        -0.1, 0.1, size=(N_POS + 1, POS_SIZE)), dtype=np.float32)
    pos2_w = np.asarray(np.random.RandomState(92).uniform(
        -0.1, 0.1, size=(N_POS + 1, POS_SIZE)), dtype=np.float32)
    # musk embedding: fixed one-hot table (used only by the faithful reference)
    musk_w = np.asarray([[0, 0, 0], [1, 0, 0], [0, 1, 0], [0, 0, 1]],
                        dtype=np.float32)
    # conv weight (seed 31) and zero bias, as in the module
    conv_w = np.asarray(np.random.RandomState(31).uniform(
        -0.1, 0.1, size=(HIDDEN_SIZE, D_IN, 1, WINDOW)), dtype=np.float32)
    conv_b = np.zeros(HIDDEN_SIZE, dtype=np.float32)
    return word_w, pos1_w, pos2_w, musk_w, conv_w, conv_b


def fold_params(word_w, pos1_w, pos2_w, conv_w, conv_b):
    """Fold embedding tables + conv weight + channel interleave into one matrix (numpy, f64)."""
    H = conv_w.shape[0]
    # block-diagonal embedding table: combined one-hot (44) -> concat embedding (32)
    t_bd = np.zeros((VTOT, D_IN), dtype=np.float64)
    t_bd[:NW2, :INPUT_SIZE] = word_w
    t_bd[NW2:NW2 + NP1, INPUT_SIZE:INPUT_SIZE + POS_SIZE] = pos1_w
    t_bd[NW2 + NP1:, INPUT_SIZE + POS_SIZE:] = pos2_w
    # window w of the conv applies to token t + w - 1  (prev / cur / next)
    blocks = [t_bd @ conv_w[:, :, 0, w].astype(np.float64).T for w in range(WINDOW)]
    w_big = np.concatenate(blocks, axis=0)                     # (3*VTOT, H)
    # column-triple so output lane j = conv channel j//3  (torch h-major flatten)
    w_wide = np.repeat(w_big, 3, axis=1).astype(np.float32)    # (3*VTOT, 3H)
    b_wide = np.repeat(conv_b.astype(np.float64), 3)[None, :].astype(np.float32)
    piece_ids = (np.arange(3 * H, dtype=np.int32) % 3 + 1)[None, :]  # (1, 3H)
    return w_wide, b_wide, piece_ids


# ------------------------------- reference -----------------------------------
def embed(inputs, pos1, pos2, word_w, pos1_w, pos2_w):
    e = jnp.take(word_w, inputs, axis=0)
    p1 = jnp.take(pos1_w, pos1, axis=0)
    p2 = jnp.take(pos2_w, pos2, axis=0)
    return jnp.concatenate([e, p1, p2], axis=2)  # (B, L, D_IN)


def reference(emb, musk, w_conv, bias, musk_table):
    """Faithful to torch forward (separate embed, conv, +max_pos/-max_pos pooling trick)."""
    B, L, D = emb.shape
    H = w_conv.shape[0]
    mask1h = jnp.take(musk_table, musk, axis=0)                       # (B, L, 3)
    x = jnp.pad(emb, ((0, 0), (1, 1), (0, 0)))
    conv = jnp.zeros((B, L, H), jnp.float32)
    for w in range(WINDOW):
        conv = conv + jnp.einsum('bld,hd->blh', x[:, w:w + L, :],
                                 w_conv[:, :, 0, w])
    conv = conv + bias
    boosted = conv[:, :, None, :] + mask1h[:, :, :, None] * MAX_POS   # (B,L,3,H)
    pooled = jnp.max(boosted, axis=1) - MAX_POS                       # (B,3,H)
    act = jnp.maximum(pooled, 0.0)
    return jnp.transpose(act, (0, 2, 1)).reshape(B, H * 3)


# ----------------------------------- main ------------------------------------
if __name__ == "__main__":
    key = jax.random.PRNGKey(0)
    k1, k2, k3, k4 = jax.random.split(key, 4)
    inputs = jax.random.randint(k1, (BATCH, SEQ_LEN), 0, N_WORD, dtype=jnp.int32)
    pos1 = jax.random.randint(k2, (BATCH, SEQ_LEN), 0, N_POS, dtype=jnp.int32)
    pos2 = jax.random.randint(k3, (BATCH, SEQ_LEN), 0, N_POS, dtype=jnp.int32)
    musk = jax.random.randint(k4, (BATCH, SEQ_LEN), 0, 4, dtype=jnp.int32)

    word_w, pos1_w, pos2_w, musk_w, conv_w, conv_b = build_params()
    w_wide_np, b_wide_np, piece_np = fold_params(word_w, pos1_w, pos2_w, conv_w, conv_b)
    w_wide = jnp.asarray(w_wide_np)
    b_wide = jnp.asarray(b_wide_np)
    piece_ids = jnp.asarray(piece_np)

    run = jax.jit(pcnn_encoder_pallas)   # index prep + pallas_call = one executable
    out = run(inputs, pos1, pos2, musk, w_wide, b_wide, piece_ids)
    out = jax.block_until_ready(out)

    # independent, unfused reference path (embed -> conv -> ±max_pos pool -> relu)
    embedded = embed(inputs, pos1, pos2, jnp.asarray(word_w),
                     jnp.asarray(pos1_w), jnp.asarray(pos2_w))
    ref = reference(embedded, musk, jnp.asarray(conv_w), jnp.asarray(conv_b),
                    jnp.asarray(musk_w))

    assert out.shape == (BATCH, HIDDEN_SIZE * 3)
    # atol covers the ~1e-5 ulp-at-100 loss inherent to the reference's
    # +max_pos/-max_pos trick and the f32 rounding of the host-side weight fold
    # (the kernel uses an exact piece-select instead of the ±100 boost).
    np.testing.assert_allclose(np.asarray(out), np.asarray(ref),
                               rtol=1e-5, atol=1e-4)
    print("KERNEL_OK")
</pallas_src>

<mosaic_0001>
module attributes {stable_mosaic.version = 11 : i64} {
  func.func @pcnn_kernel(%arg0: i32, %arg1: memref<16x10xi32, #tpu.memory_space<vmem>>, %arg2: memref<1x96xi32, #tpu.memory_space<vmem>>, %arg3: memref<132x96xf32, #tpu.memory_space<vmem>>, %arg4: memref<1x96xf32, #tpu.memory_space<vmem>>, %arg5: memref<2x96xf32, #tpu.memory_space<vmem>>) attributes {dimension_semantics = [#tpu.dimension_semantics<parallel>], iteration_bounds = array<i64: 1>, scalar_prefetch = 0 : i64, scratch_operands = 0 : i64, tpu.core_type = #tpu.core_type<tc>, window_params = [{transform_indices = @transform_0, window_bounds = array<i64: 16, 10>}, {pipeline_mode = #tpu.pipeline_mode<synchronous>, transform_indices = @transform_1, window_bounds = array<i64: 1, 96>}, {pipeline_mode = #tpu.pipeline_mode<synchronous>, transform_indices = @transform_2, window_bounds = array<i64: 132, 96>}, {pipeline_mode = #tpu.pipeline_mode<synchronous>, transform_indices = @transform_3, window_bounds = array<i64: 1, 96>}, {transform_indices = @transform_4, window_bounds = array<i64: 2, 96>}]} {
    %c0 = arith.constant 0 : index
    %c0_0 = arith.constant 0 : index
    %0 = vector.load %arg1[%c0, %c0_0] : memref<16x10xi32, #tpu.memory_space<vmem>>, vector<16x10xi32>
    %1 = tpu.iota {dimensions = array<i32: 1>} : vector<16x132xi32>
    %2 = vector.extract_strided_slice %0 {offsets = [0, 1], sizes = [16, 1], strides = [1, 1]} : vector<16x10xi32> to vector<16x1xi32>
    %3 = vector.broadcast %2 : vector<16x1xi32> to vector<16x132xi32>
    %4 = arith.cmpi eq, %1, %3 : vector<16x132xi32>
    %5 = vector.extract_strided_slice %0 {offsets = [0, 2], sizes = [16, 1], strides = [1, 1]} : vector<16x10xi32> to vector<16x1xi32>
    %6 = vector.broadcast %5 : vector<16x1xi32> to vector<16x132xi32>
    %7 = arith.cmpi eq, %1, %6 : vector<16x132xi32>
    %8 = arith.ori %4, %7 : vector<16x132xi1>
    %9 = vector.extract_strided_slice %0 {offsets = [0, 3], sizes = [16, 1], strides = [1, 1]} : vector<16x10xi32> to vector<16x1xi32>
    %10 = vector.broadcast %9 : vector<16x1xi32> to vector<16x132xi32>
    %11 = arith.cmpi eq, %1, %10 : vector<16x132xi32>
    %12 = arith.ori %8, %11 : vector<16x132xi1>
    %13 = vector.extract_strided_slice %0 {offsets = [0, 4], sizes = [16, 1], strides = [1, 1]} : vector<16x10xi32> to vector<16x1xi32>
    %14 = vector.broadcast %13 : vector<16x1xi32> to vector<16x132xi32>
    %15 = arith.cmpi eq, %1, %14 : vector<16x132xi32>
    %16 = arith.ori %12, %15 : vector<16x132xi1>
    %17 = vector.extract_strided_slice %0 {offsets = [0, 5], sizes = [16, 1], strides = [1, 1]} : vector<16x10xi32> to vector<16x1xi32>
    %18 = vector.broadcast %17 : vector<16x1xi32> to vector<16x132xi32>
    %19 = arith.cmpi eq, %1, %18 : vector<16x132xi32>
    %20 = arith.ori %16, %19 : vector<16x132xi1>
    %21 = vector.extract_strided_slice %0 {offsets = [0, 6], sizes = [16, 1], strides = [1, 1]} : vector<16x10xi32> to vector<16x1xi32>
    %22 = vector.broadcast %21 : vector<16x1xi32> to vector<16x132xi32>
    %23 = arith.cmpi eq, %1, %22 : vector<16x132xi32>
    %24 = arith.ori %20, %23 : vector<16x132xi1>
    %25 = vector.extract_strided_slice %0 {offsets = [0, 7], sizes = [16, 1], strides = [1, 1]} : vector<16x10xi32> to vector<16x1xi32>
    %26 = vector.broadcast %25 : vector<16x1xi32> to vector<16x132xi32>
    %27 = arith.cmpi eq, %1, %26 : vector<16x132xi32>
    %28 = arith.ori %24, %27 : vector<16x132xi1>
    %29 = vector.extract_strided_slice %0 {offsets = [0, 8], sizes = [16, 1], strides = [1, 1]} : vector<16x10xi32> to vector<16x1xi32>
    %30 = vector.broadcast %29 : vector<16x1xi32> to vector<16x132xi32>
    %31 = arith.cmpi eq, %1, %30 : vector<16x132xi32>
    %32 = arith.ori %28, %31 : vector<16x132xi1>
    %33 = vector.extract_strided_slice %0 {offsets = [0, 9], sizes = [16, 1], strides = [1, 1]} : vector<16x10xi32> to vector<16x1xi32>
    %34 = vector.broadcast %33 : vector<16x1xi32> to vector<16x132xi32>
    %35 = arith.cmpi eq, %1, %34 : vector<16x132xi32>
    %36 = arith.ori %32, %35 : vector<16x132xi1>
    %37 = arith.extui %36 : vector<16x132xi1> to vector<16x132xi32>
    %38 = arith.sitofp %37 : vector<16x132xi32> to vector<16x132xf32>
    %c0_1 = arith.constant 0 : index
    %c0_2 = arith.constant 0 : index
    %39 = vector.load %arg3[%c0_1, %c0_2] : memref<132x96xf32, #tpu.memory_space<vmem>>, vector<132x96xf32>
    %cst = arith.constant dense<0.000000e+00> : vector<16x96xf32>
    %40 = tpu.matmul %38, %39, %cst {dimension_numbers = #tpu.dot_dimension_numbers<[1], [0], [0], [1], [0, 0, 1, 1], [], []>} : vector<16x132xf32>, vector<132x96xf32>, vector<16x96xf32> -> vector<16x96xf32>
    %c0_3 = arith.constant 0 : index
    %c0_4 = arith.constant 0 : index
    %41 = vector.load %arg4[%c0_3, %c0_4] : memref<1x96xf32, #tpu.memory_space<vmem>>, vector<1x96xf32>
    %42 = vector.broadcast %41 : vector<1x96xf32> to vector<16x96xf32>
    %43 = arith.addf %40, %42 : vector<16x96xf32>
    %44 = vector.extract_strided_slice %0 {offsets = [0, 0], sizes = [16, 1], strides = [1, 1]} : vector<16x10xi32> to vector<16x1xi32>
    %c0_5 = arith.constant 0 : index
    %c0_6 = arith.constant 0 : index
    %45 = vector.load %arg2[%c0_5, %c0_6] : memref<1x96xi32, #tpu.memory_space<vmem>>, vector<1x96xi32>
    %46 = vector.broadcast %44 : vector<16x1xi32> to vector<16x96xi32>
    %47 = vector.broadcast %45 : vector<1x96xi32> to vector<16x96xi32>
    %48 = arith.cmpi eq, %46, %47 : vector<16x96xi32>
    %cst_7 = arith.constant -1.000000e+30 : f32
    %49 = vector.broadcast %cst_7 : f32 to vector<16x96xf32>
    %50 = arith.select %48, %43, %49 : vector<16x96xi1>, vector<16x96xf32>
    %51 = vector.shape_cast %50 : vector<16x96xf32> to vector<2x8x96xf32>
    %cst_8 = arith.constant dense<0xFF800000> : vector<2x96xf32>
    %52 = vector.multi_reduction <maximumf>, %51, %cst_8 [1] : vector<2x8x96xf32> to vector<2x96xf32>
    %cst_9 = arith.constant 0.000000e+00 : f32
    %53 = vector.broadcast %cst_9 : f32 to vector<2x96xf32>
    %54 = arith.maximumf %52, %53 : vector<2x96xf32>
    %c0_10 = arith.constant 0 : index
    %c0_11 = arith.constant 0 : index
    %55 = vector.load %arg5[%c0_10, %c0_11] : memref<2x96xf32, #tpu.memory_space<vmem>>, vector<2x96xf32>
    tpu.vector_store %arg5[%c0_10, %c0_11], %54 {strides = array<i32>} : memref<2x96xf32, #tpu.memory_space<vmem>>, vector<2x96xf32>,
    return
  }
  func.func @transform_0(%arg0: i32) -> (i32, i32) {
    %c0_i32 = arith.constant 0 : i32
    %c0_i32_0 = arith.constant 0 : i32
    return %arg0, %c0_i32 : i32, i32
  }
  func.func @transform_1(%arg0: i32) -> (i32, i32) {
    %c0_i32 = arith.constant 0 : i32
    %c0_i32_0 = arith.constant 0 : i32
    %c0_i32_1 = arith.constant 0 : i32
    return %c0_i32, %c0_i32_0 : i32, i32
  }
  func.func @transform_2(%arg0: i32) -> (i32, i32) {
    %c0_i32 = arith.constant 0 : i32
    %c0_i32_0 = arith.constant 0 : i32
    %c0_i32_1 = arith.constant 0 : i32
    return %c0_i32, %c0_i32_0 : i32, i32
  }
  func.func @transform_3(%arg0: i32) -> (i32, i32) {
    %c0_i32 = arith.constant 0 : i32
    %c0_i32_0 = arith.constant 0 : i32
    %c0_i32_1 = arith.constant 0 : i32
    return %c0_i32, %c0_i32_0 : i32, i32
  }
  func.func @transform_4(%arg0: i32) -> (i32, i32) {
    %c0_i32 = arith.constant 0 : i32
    %c0_i32_0 = arith.constant 0 : i32
    return %arg0, %c0_i32 : i32, i32
  }
}

</mosaic_0001>

<bundles_post_ra>
// kernel: pcnn_encoder_pallas.1
= control target key start
LH: loop header
LB: loop body
LE: loop exit
PB: predicated region body
PF: predicated region fallthrough
CT: control target
= control target key end

     0   :  { %v420_v1 = vmov 2   ;;  %v421_v2 = vmov 1   ;;  %s658_s0 = inlined_call_operand.vmem [shape: s32[16,10], index: 0, kind: input, shape index: {}]   ;;  %s659_s1 = inlined_call_operand.vmem [shape: s32[1,96], index: 1, kind: input, shape index: {}]   ;;  %s660_s2 = inlined_call_operand.vmem [shape: f32[132,96], index: 2, kind: input, shape index: {}]   ;;  %s661_s3 = inlined_call_operand.vmem [shape: f32[1,96], index: 3, kind: input, shape index: {}]   ;;  %s662_s4 = inlined_call_operand.hbm [shape: f32[2,96], index: 4, kind: output, shape index: {}]  }
   0x1   :  { %v461_v0 = vld [vmem:[%s658_s0] sm:$0xff]  ;;  %381 = vset.pattern.permute.xlu1 %v420_v1  ;;  %380 = vset.pattern.permute.xlu0 %v421_v2 }
   0x2   :  { %9 = vsyncpa [#allocation3], 0  ;;  %34 = vperm.xlu1 %381, %v461_v0   ;;  %24 = vperm.xlu0 %380, %v461_v0   ;;  %v468_v3 = vld [vmem:[%s658_s0 + $0x8] sm:$0xff]  ;;  %v422_v4 = vmov 3   ;;  %v153_v5 = vld [vmem:[%s660_s2] sm:$0xff]  ;;  %v423_v8 = vmov 0.0|0.0   ;;  %v20_v40 = vlaneseq }
   0x3   :  { %v154_v6 = vld [vmem:[%s660_s2 + $0x8] sm:$0xff]  ;;  %325 = vmatprep.subr.bf16.mxu0 %v423_v8  ;;  %349 = vmatprep.subr.bf16.mxu1 %v423_v8  ;;  %v424_v9 = vmov 4   ;;  %v155_v10 = vld [vmem:[%s660_s2 + $0x10] sm:$0xff]  ;;  %v156_v11 = vld [vmem:[%s660_s2 + $0x18] sm:$0xff]  ;;  %v425_v13 = vmov 5   ;;  %v426_v14 = vmov 6  }
   0x4   :  { %v326_v7 = vpack.c.bf16 %v154_v6, %v153_v5  ;;  %v329_v12 = vpack.c.bf16 %v156_v11, %v155_v10  ;;  %v157_v15 = vld [vmem:[%s660_s2 + $0x20] sm:$0xff]  ;;  %v158_v16 = vld [vmem:[%s660_s2 + $0x28] sm:$0xff]  ;;  %v159_v18 = vld [vmem:[%s660_s2 + $0x30] sm:$0xff]  ;;  %v427_v20 = vmov 7   ;;  %v428_v24 = vmov 9  }
   0x5   :  { %v332_v17 = vpack.c.bf16 %v158_v16, %v157_v15  ;;  %v160_v19 = vld [vmem:[%s660_s2 + $0x38] sm:$0xff]  ;;  %v161_v22 = vld [vmem:[%s660_s2 + $0x40] sm:$0xff]  ;;  %v162_v23 = vld [vmem:[%s660_s2 + $0x48] sm:$0xff]  ;;  %v429_v31 = vmov 8   ;;  %v430_v36 = vmov 0.0   ;;  %vm184_vm0 = vcmask 1043456  }
   0x6   :  { %37 = vperm.xlu1 %381, %v468_v3   ;;  %27 = vperm.xlu0 %380, %v468_v3   ;;  %v335_v21 = vpack.c.bf16 %v160_v19, %v159_v18  ;;  %v338_v25 = vpack.c.bf16 %v162_v23, %v161_v22  ;;  %v163_v26 = vld [vmem:[%s660_s2 + $0x50] sm:$0xff]  ;;  %v164_v27 = vld [vmem:[%s660_s2 + $0x58] sm:$0xff]  ;;  %v165_v29 = vld [vmem:[%s660_s2 + $0x60] sm:$0xff]  ;;  %v431_v38 = vmov 0   ;;  %v557_v43 = vand.u32 127, %v20_v40 }
   0x7   :  { %327 = vmatpush1.bf16.msra.mxu0 %v326_v7  ;;  %358 = vmatpush1.bf16.msra.mxu1 %v326_v7  ;;  %v341_v28 = vpack.c.bf16 %v164_v27, %v163_v26  ;;  %v166_v30 = vld [vmem:[%s660_s2 + $0x68] sm:$0xff]  ;;  %v167_v33 = vld [vmem:[%s660_s2 + $0x70] sm:$0xff]  ;;  %v168_v34 = vld [vmem:[%s660_s2 + $0x78] sm:$0xff]  ;;  %v669_v54 = vmov 0  ;;  %v672_v60 = vmov 0  ;;  %v674_v62 = vmov 0 }
   0x8   :  { %328 = vmatprep.subr.bf16.mxu0 %v423_v8  ;;  %350 = vmatprep.subr.bf16.mxu1 %v423_v8  ;;  %v344_v32 = vpack.c.bf16 %v166_v30, %v165_v29  ;;  %v347_v35 = vpack.c.bf16 %v168_v34, %v167_v33  ;;  %v169_v37 = vld [vmem:[%s660_s2 + $0x80] sm:$0xf]  ;;  %v560_v46 = vadd.s32 128, %v557_v43 }
   0x9   :  { %v324_v6 = vld [vmem:[%s659_s1] ss:$0 sm:$0xff]  ;;  %s432_s1 = smov [#allocation2]  }
   0xa   :  { %383 = vset.pattern.permute.xlu1 %v422_v4  ;;  %382 = vset.pattern.permute.xlu0 %v422_v4 }
   0xb   :  { %51 = vperm.xlu1 %383, %v468_v3   ;;  %48 = vperm.xlu0 %382, %v461_v0  }
   0xc   :  { %330 = vmatpush1.bf16.msra.mxu0 %v329_v12  ;;  %359 = vmatpush1.bf16.msra.mxu1 %v329_v12 }
   0xd   :  { %331 = vmatprep.subr.bf16.mxu0 %v423_v8  ;;  %351 = vmatprep.subr.bf16.mxu1 %v423_v8 }
   0xf   :  { %384 = vset.pattern.permute.xlu1 %v424_v9  ;;  %385 = vset.pattern.permute.xlu0 %v424_v9 }
  0x10   :  { %62 = vperm.xlu1 %384, %v461_v0   ;;  %65 = vperm.xlu0 %385, %v468_v3  }
  0x11   :  { %333 = vmatpush1.bf16.msra.mxu0 %v332_v17  ;;  %360 = vmatpush1.bf16.msra.mxu1 %v332_v17 }
  0x12   :  { %334 = vmatprep.subr.bf16.mxu0 %v423_v8  ;;  %352 = vmatprep.subr.bf16.mxu1 %v423_v8 }
  0x14   :  { %386 = vset.pattern.permute.xlu1 %v425_v13  ;;  %387 = vset.pattern.permute.xlu0 %v426_v14 }
  0x15   :  { %76 = vperm.xlu1 %386, %v461_v0   ;;  %90 = vperm.xlu0 %387, %v461_v0  }
  0x16   :  { %336 = vmatpush1.bf16.msra.mxu0 %v335_v21  ;;  %361 = vmatpush1.bf16.msra.mxu1 %v335_v21 }
  0x17   :  { %337 = vmatprep.subr.bf16.mxu0 %v423_v8  ;;  %353 = vmatprep.subr.bf16.mxu1 %v423_v8 }
  0x19   :  { %79 = vperm.xlu1 %386, %v468_v3   ;;  %390 = vset.pattern.permute.xlu0 %v427_v20 }
  0x1a   :  { %107 = vperm.xlu0 %390, %v468_v3   ;;  %339 = vmatpush1.bf16.msra.mxu0 %v338_v25 }
  0x1b   :  { %340 = vmatprep.subr.bf16.mxu0 %v423_v8  ;;  %362 = vmatpush1.bf16.msra.mxu1 %v338_v25 }
  0x1c   :  { %354 = vmatprep.subr.bf16.mxu1 %v423_v8 }
  0x1d   :  { %388 = vset.pattern.permute.xlu1 %v426_v14 }
  0x1e   :  { %93 = vperm.xlu1 %388, %v468_v3   ;;  %392 = vset.pattern.permute.xlu0 %v428_v24 }
  0x1f   :  { %132 = vperm.xlu0 %392, %v461_v0   ;;  %342 = vmatpush1.bf16.msra.mxu0 %v341_v28 }
  0x20   :  { %343 = vmatprep.subr.bf16.mxu0 %v423_v8  ;;  %363 = vmatpush1.bf16.msra.mxu1 %v341_v28 }
  0x21   :  { %355 = vmatprep.subr.bf16.mxu1 %v423_v8 }
  0x22   :  { %389 = vset.pattern.permute.xlu1 %v427_v20 }
  0x23   :  { %104 = vperm.xlu1 %389, %v461_v0   ;;  %345 = vmatpush1.bf16.msra.mxu0 %v344_v32 }
  0x24   :  { %346 = vmatprep.subr.bf16.mxu0 %v423_v8  ;;  %364 = vmatpush1.bf16.msra.mxu1 %v344_v32 }
  0x25   :  { %356 = vmatprep.subr.bf16.mxu1 %v423_v8  ;;  %395 = vset.pattern.permute.xlu0 %v431_v38  ;;  %v320_v8 = vld [vmem:[%s661_s3] ss:$0 sm:$0xff]  ;;  %s308_s3 = sshll.u32 %s432_s1, 4  ;;  %s309_s3 = int_to_ptr.vmem [resolvable:$true] %s308_s3 }
  0x26   :  { %268 = vperm.xlu0 %395, %v468_v3   ;;  %s396_s28 = scalar_lea.vmem %s309_s3, 32  ;;  %p401_p1 = scmp.lt.s32.totalorder %s309_s3, %s309_s3 }
  0x27   :  { %391 = vset.pattern.permute.xlu1 %v429_v31  ;;  %348 = vmatpush1.bf16.msra.mxu0 %v347_v35  ;;  %p397_p0 = scmp.ne.s32.totalorder %s309_s3, %s396_s28  ;;  %p402_p2 = scmp.lt.s32.totalorder %s396_s28, %s396_s28 }
  0x28   :  { %118 = vperm.xlu1 %391, %v461_v0   ;;  %220 = vmatprep.subr.mxu0 %v430_v36 }
  0x29   :  { %365 = vmatpush1.bf16.msra.mxu1 %v347_v35  ;;  %p403_p3 = por %p402_p2, %p401_p1 }
  0x2a   :  { %357 = vmatprep.subr.mxu1 %v430_v36 }
  0x2b   :  { %321 = vmatpush1.msk.msra.mxu0 %vm184_vm0, %v169_v37  ;;  %p404_p4 = pnand %p403_p3, %p397_p0 }
  0x2c   :  { %121 = vperm.xlu1 %391, %v468_v3  }
  0x2d   :  { %366 = vmatpush1.msk.msra.mxu1 %vm184_vm0, %v169_v37 }
  0x30   :  { %393 = vset.pattern.permute.xlu1 %v428_v24 }
  0x31   :  { %135 = vperm.xlu1 %393, %v468_v3  }
  0x35   :  { %394 = vset.pattern.permute.xlu1 %v431_v38 }
  0x36   :  { %265 = vperm.xlu1 %394, %v461_v0  }
  0x81   :  { %v35_v39 = vpop.permute.xlu1 %34  ;;  %v25_v41 = vpop.permute.xlu0 %24 }
  0x82   :  { %vm39_vm1 = vcmp.eq.s32.totalorder %v557_v43, %v35_v39  ;;  %vm29_vm2 = vcmp.eq.s32.totalorder %v557_v43, %v25_v41  ;;  %vm40_vm3 = vcmp.eq.s32.totalorder %v560_v46, %v35_v39  ;;  %vm30_vm4 = vcmp.eq.s32.totalorder %v560_v46, %v25_v41 }
  0x83   :  { %vm568_vm7 = vmor %vm29_vm2, %vm39_vm1 }
  0x84   :  { %vm574_vm10 = vmor %vm30_vm4, %vm40_vm3 }
  0x85   :  { %v38_v42 = vpop.permute.xlu1 %37  ;;  %v28_v45 = vpop.permute.xlu0 %27 }
  0x86   :  { %vm41_vm5 = vcmp.eq.s32.totalorder %v557_v43, %v38_v42  ;;  %vm31_vm6 = vcmp.eq.s32.totalorder %v557_v43, %v28_v45  ;;  %vm42_vm8 = vcmp.eq.s32.totalorder %v560_v46, %v38_v42  ;;  %vm32_vm9 = vcmp.eq.s32.totalorder %v560_v46, %v28_v45 }
  0x87   :  { %vm45_vm12 = vmor %vm31_vm6, %vm41_vm5 }
  0x88   :  { %vm46_vm14 = vmor %vm32_vm9, %vm42_vm8 }
  0x8a   :  { %v52_v44 = vpop.permute.xlu1 %51  ;;  %v49_v48 = vpop.permute.xlu0 %48 }
  0x8b   :  { %vm55_vm11 = vcmp.eq.s32.totalorder %v557_v43, %v52_v44  ;;  %vm56_vm13 = vcmp.eq.s32.totalorder %v560_v46, %v52_v44  ;;  %vm53_vm15 = vcmp.eq.s32.totalorder %v557_v43, %v49_v48  ;;  %vm54_vm1 = vcmp.eq.s32.totalorder %v560_v46, %v49_v48 }
  0x8c   :  { %vm581_vm0 = vmor %vm45_vm12, %vm55_vm11 }
  0x8d   :  { %vm586_vm2 = vmor %vm46_vm14, %vm56_vm13 }
  0x8e   :  { %v670_v54 = vsel %vm586_vm2, 4294967295, %v669_v54  ;;  %vm57_vm4 = vmor %vm568_vm7, %vm53_vm15 }
  0x8f   :  { %v63_v47 = vpop.permute.xlu1 %62  ;;  %v66_v53 = vpop.permute.xlu0 %65  ;;  %vm58_vm6 = vmor %vm574_vm10, %vm54_vm1 }
  0x90   :  { %vm67_vm3 = vcmp.eq.s32.totalorder %v557_v43, %v63_v47  ;;  %vm68_vm5 = vcmp.eq.s32.totalorder %v560_v46, %v63_v47  ;;  %vm69_vm8 = vcmp.eq.s32.totalorder %v557_v43, %v66_v53  ;;  %vm70_vm14 = vcmp.eq.s32.totalorder %v560_v46, %v66_v53 }
  0x91   :  { %vm71_vm9 = vmor %vm57_vm4, %vm67_vm3  ;;  %vm671_vm3 = vnez %v670_v54 }
  0x92   :  { %vm72_vm12 = vmor %vm58_vm6, %vm68_vm5 }
  0x93   :  { %vm73_vm2 = vmor %vm581_vm0, %vm69_vm8 }
  0x94   :  { %v77_v51 = vpop.permute.xlu1 %76  ;;  %v91_v56 = vpop.permute.xlu0 %90  ;;  %vm74_vm4 = vmor %vm671_vm3, %vm70_vm14 }
  0x95   :  { %vm81_vm11 = vcmp.eq.s32.totalorder %v557_v43, %v77_v51  ;;  %vm82_vm13 = vcmp.eq.s32.totalorder %v560_v46, %v77_v51  ;;  %vm95_vm15 = vcmp.eq.s32.totalorder %v557_v43, %v91_v56  ;;  %vm96_vm10 = vcmp.eq.s32.totalorder %v560_v46, %v91_v56 }
  0x96   :  { %vm85_vm7 = vmor %vm71_vm9, %vm81_vm11 }
  0x97   :  { %vm86_vm1 = vmor %vm72_vm12, %vm82_vm13 }
  0x98   :  { %v80_v55 = vpop.permute.xlu1 %79  ;;  %vm99_vm6 = vmor %vm85_vm7, %vm95_vm15 }
  0x99   :  { %vm83_vm5 = vcmp.eq.s32.totalorder %v557_v43, %v80_v55  ;;  %vm84_vm0 = vcmp.eq.s32.totalorder %v560_v46, %v80_v55  ;;  %v108_v58 = vpop.permute.xlu0 %107  ;;  %vm100_vm8 = vmor %vm86_vm1, %vm96_vm10 }
  0x9a   :  { %vm87_vm11 = vmor %vm73_vm2, %vm83_vm5 }
  0x9b   :  { %vm88_vm13 = vmor %vm74_vm4, %vm84_vm0 }
  0x9d   :  { %v94_v57 = vpop.permute.xlu1 %93 }
  0x9e   :  { %vm97_vm9 = vcmp.eq.s32.totalorder %v557_v43, %v94_v57  ;;  %vm98_vm12 = vcmp.eq.s32.totalorder %v560_v46, %v94_v57  ;;  %v133_v61 = vpop.permute.xlu0 %132 }
  0x9f   :  { %vm611_vm14 = vmor %vm87_vm11, %vm97_vm9  ;;  %vm138_vm5 = vcmp.eq.s32.totalorder %v560_v46, %v133_v61  ;;  %vm137_vm9 = vcmp.eq.s32.totalorder %v557_v43, %v133_v61 }
  0xa0   :  { %v673_v60 = vsel %vm611_vm14, 4294967295, %v672_v60  ;;  %vm616_vm15 = vmor %vm88_vm13, %vm98_vm12  ;;  %vm177_vm14 = vcmask 31744   ;;  %vm111_vm12 = vcmp.eq.s32.totalorder %v557_v43, %v108_v58 }
  0xa1   :  { %v675_v62 = vsel %vm616_vm15, 4294967295, %v674_v62  ;;  %vm112_vm15 = vcmp.eq.s32.totalorder %v560_v46, %v108_v58 }
  0xa2   :  { %v105_v59 = vpop.permute.xlu1 %104 }
  0xa3   :  { %vm109_vm3 = vcmp.eq.s32.totalorder %v557_v43, %v105_v59  ;;  %vm110_vm7 = vcmp.eq.s32.totalorder %v560_v46, %v105_v59 }
  0xa4   :  { %vm113_vm1 = vmor %vm99_vm6, %vm109_vm3  ;;  %vm676_vm3 = vnez %v673_v60 }
  0xa5   :  { %vm114_vm10 = vmor %vm100_vm8, %vm110_vm7  ;;  %v269_v14 = vpop.permute.xlu0 %268 }
  0xa6   :  { %vm115_vm7 = vmor %vm676_vm3, %vm111_vm12  ;;  %vm278_vm12 = vcmask 785408  }
  0xa7   :  { %v119_v63 = vpop.permute.xlu1 %118 }
  0xa8   :  { %vm123_vm2 = vcmp.eq.s32.totalorder %v557_v43, %v119_v63  ;;  %vm124_vm4 = vcmp.eq.s32.totalorder %v560_v46, %v119_v63 }
  0xa9   :  { %vm127_vm0 = vmor %vm113_vm1, %vm123_vm2 }
  0xaa   :  { %vm128_vm11 = vmor %vm114_vm10, %vm124_vm4  ;;  %vm677_vm10 = vnez %v675_v62 }
  0xab   :  { %v122_v0 = vpop.permute.xlu1 %121  ;;  %vm142_vm13 = vmor %vm128_vm11, %vm138_vm5 }
  0xac   :  { %v317_v1 = vsel %vm142_vm13, 1.0, %v430_v36  ;;  %vm141_vm6 = vmor %vm127_vm0, %vm137_vm9  ;;  %vm125_vm8 = vcmp.eq.s32.totalorder %v557_v43, %v122_v0  ;;  %vm126_vm1 = vcmp.eq.s32.totalorder %v560_v46, %v122_v0 }
  0xad   :  { %322 = vmatprep.mubr.msk.f32.mxu0 %vm177_vm14, %v317_v1  ;;  %v316_v2 = vsel %vm141_vm6, 1.0, %v430_v36  ;;  %vm116_vm2 = vmor %vm677_vm10, %vm112_vm15  ;;  %vm297_vm6 = vcmask 1041409  }
  0xae   :  { %253 = vmatmul.mubr.f32.vlgmr.msra.gmra.mrb[0].mxu0 %v316_v2  ;;  %vm129_vm4 = vmor %vm115_vm7, %vm125_vm8  ;;  %vm300_vm8 = vcmask 779264  }
  0xaf   :  { %vm130_vm9 = vmor %vm116_vm2, %vm126_vm1 }
  0xb0   :  { %v136_v3 = vpop.permute.xlu1 %135 }
  0xb1   :  { %vm139_vm5 = vcmp.eq.s32.totalorder %v557_v43, %v136_v3  ;;  %vm140_vm0 = vcmp.eq.s32.totalorder %v560_v46, %v136_v3 }
  0xb2   :  { %vm144_vm11 = vmor %vm130_vm9, %vm140_vm0 }
  0xb3   :  { %v319_v4 = vsel %vm144_vm11, 1.0, %v430_v36  ;;  %vm143_vm13 = vmor %vm129_vm4, %vm139_vm5 }
  0xb4   :  { %323 = vmatprep.mubr.msk.f32.mxu1 %vm177_vm14, %v319_v4  ;;  %v318_v5 = vsel %vm143_vm13, 1.0, %v430_v36  ;;  %vm275_vm14 = vcmp.eq.s32.totalorder %v269_v14, %v324_v6 }
  0xb5   :  { %258 = vmatmul.mubr.f32.vlgmr.msra.gmra.mrb[0].mxu1 %v318_v5  ;;  %v266_v7 = vpop.permute.xlu1 %265 }
  0xb6   :  { %vm274_vm15 = vcmp.eq.s32.totalorder %v266_v7, %v324_v6 }
 0x181   :  { %v254_v9 = vpop.f32.mrb[0].mxu0 }
 0x182   :  { %v255_v10 = vadd.f32 %v320_v8, %v254_v9  ;;  %v256_v11 = vpop.f32.mrb[1].mxu0 }
 0x184   :  { %v276_v12 = vsel %vm274_vm15, %v255_v10, -1e+30 }
 0x185   :  { %v279_v13 = vsel %vm278_vm12, %v276_v12, -inf }
 0x186   :  { %v280_v15 = vrot.slane %v279_v13, 4 }
 0x188   :  { %v281_v16 = vmax.f32 %v279_v13, %v280_v15  ;;  %v259_v17 = vpop.f32.mrb[0].mxu1 }
 0x189   :  { %v260_v18 = vadd.f32 %v320_v8, %v259_v17  ;;  %v261_v19 = vpop.f32.mrb[1].mxu1 }
 0x18a   :  { %v282_v20 = vrot.slane %v281_v16, 2 }
 0x18b   :  { %v277_v21 = vsel %vm275_vm14, %v260_v18, -1e+30 }
 0x18c   :  { %v286_v22 = vsel %vm278_vm12, %v277_v21, -inf  ;;  %v283_v23 = vmax.f32 %v281_v16, %v282_v20 }
 0x18d   :  { %v287_v24 = vrot.slane %v286_v22, 4 }
 0x18e   :  { %v284_v26 = vrot.slane %v283_v23, 1 }
 0x18f   :  { %v288_v25 = vmax.f32 %v286_v22, %v287_v24 }
 0x190   :  { %v285_v29 = vmax.f32 %v283_v23, %v284_v26 }
 0x191   :  { %v289_v27 = vrot.slane %v288_v25, 2 }
 0x192   :  { %v293_v32 = vmax.f32 %v285_v29, 0.0 }
 0x193   :  { %v290_v28 = vmax.f32 %v288_v25, %v289_v27 }
 0x195   :  { %v291_v30 = vrot.slane %v290_v28, 1 }
 0x197   :  { %v292_v31 = vmax.f32 %v290_v28, %v291_v30 }
 0x199   :  { %v294_v33 = vmax.f32 %v292_v31, 0.0 }
 0x19b   :  { %v298_v34 = vsel %vm297_vm6, %v294_v33, %v293_v32 }
 0x19c   :  { %301 = vst.msk [vmem:[#allocation2] sm:$0x3] %vm300_vm8, %v298_v34 }
 0x19d   :  { %407 = shalt.err (!%p404_p4)
}
 0x19e   :  { %s408_s5 = scalar_lea.hbm %s662_s4, 32 }
 0x19f   :  { %p409_p5 = scmp.ne.s32.totalorder %s662_s4, %s408_s5  ;;  %p412_p6 = scmp.lt.u32.totalorder %s408_s5, %s662_s4 }
 0x1a1   :  { %p414_p7 = pnand %p412_p6, %p409_p5 }
 0x1a3   :  { %417 = shalt.err (!%p414_p7)
}
 0x1a4   :  { %311 = dma.vmem_to_hbm [thread:$0]  %s309_s3, 32, %s662_s4, [#allocation3]  }
 0x1a5   :  { %418 = dma.done.wait [#allocation3], 32  }
 0x1a6   :  { %419 = vsyncadd [#allocation3], 4294967264 }
 0x1a7   :  { %315 = vsyncpa [#allocation3], 1 }

</bundles_post_ra>
